<compile_context>
chip_gen: v6e
topology: v6e:2x2x1
jax: 0.10.0
libtpu: 0.0.40
codegen_flags: <defaults>
</compile_context>

<pallas_src>
import functools

import jax
import jax.numpy as jnp
from jax.experimental import pallas as pl
from jax.experimental.pallas import tpu as pltpu


def _round_up(a, m):
    return ((a + m - 1) // m) * m


def _choose_block_tb(B, block_tb):
    """Pick the batch tile (lane) width.

    * always a multiple of 128 (lane-dense blocks/stores)
    * clamped for small B (don't tanh hundreds of padded columns)
    * an even number of tiles (>= 2) once B > 256 so both v7x TCs get work
    * capped by block_tb so the VMEM footprint stays bounded (v7x: 64 MiB)
    """
    if B <= 256:
        return _round_up(max(B, 1), 128)
    ntiles = max(2, -(-B // max(int(block_tb), 128)))
    if ntiles % 2:
        ntiles += 1
    return _round_up(-(-B // ntiles), 128)


def gennet_kernel(tx_ref,
                  w1_ref, b1_ref,
                  w2_ref, b2_ref,
                  w3_ref, b3_ref,
                  wl_ref, bl_ref,
                  out_ref, *, dim, hh, inv_TT, tanh_dtype):
    # Feature-major tile: batch rides the 128-lane axis.
    tx = tx_ref[...]                      # (dim+1, TB): rows [0:dim] = raw x, row dim = raw t
    x_raw = tx[:dim, :]                   # (dim, TB)
    t_raw = tx[dim:, :]                   # (1,  TB)

    def act(z):
        # tanh_dtype=bfloat16 uses the EUP's bf16 path on v6e/v7x (~2x tanh
        # throughput); float32 for v5e (no bf16 EUP/VPU) and exactness.
        return jnp.tanh(z.astype(tanh_dtype)).astype(jnp.float32)

    # lin1 on cat((t_n, x_n)); the input normalization is folded into w1/b1
    # wrapper-side, so the kernel consumes the raw (t, x) columns directly.
    h = act(jnp.dot(w1_ref[...], tx, preferred_element_type=jnp.float32)
            + b1_ref[...])

    # Residual block 1: act(h + hh * lin2(h))
    h = act(h + hh * (jnp.dot(w2_ref[...], h, preferred_element_type=jnp.float32)
                      + b2_ref[...]))

    # Residual block 2: act(h + hh * lin3(h))
    h = act(h + hh * (jnp.dot(w3_ref[...], h, preferred_element_type=jnp.float32)
                      + b3_ref[...]))

    # Final projection back to dim (feature-major (dim, TB)).
    o = jnp.dot(wl_ref[...], h, preferred_element_type=jnp.float32) + bl_ref[...]

    # Time-dependent convex mixing with the raw (unnormalized) input.
    c1 = t_raw * inv_TT                    # t / TT
    out_ref[...] = c1 * o + (1.0 - c1) * x_raw   # lane-dense (dim, TB) store


def gennet_forward(t, inp, params, mu, std, hh, TT,
                   block_tb=16384, tanh_dtype=jnp.float32):
    """t: (B, 1), inp: (B, dim), mu/std: (1, dim). Returns (B, dim).

    Call under jax.jit so the (small) layout/weight-folding ops fuse.
    """
    B, dim = inp.shape
    ns = params["w2"].shape[0]
    f32 = jnp.float32

    w1x = params["w1x"].astype(f32)                       # (ns, dim)
    w1t = params["w1t"].astype(f32)                       # (ns, 1)
    b1 = params["b1"].astype(f32)                         # (ns, 1)
    # NOTE: assumes std has no zeros (same assumption as the PyTorch module).
    inv_std = (1.0 / std.astype(f32)).reshape(1, dim)
    mu_over_std = (mu.astype(f32) * inv_std).reshape(dim, 1)

    # Fold (x - mu)/std and (t - TT/2) into lin1's weights and bias.
    w1 = jnp.concatenate([w1x * inv_std, w1t], axis=1)    # (ns, dim+1), cols: x..., t
    b1f = b1 - w1x @ mu_over_std - w1t * (TT / 2.0)       # (ns, 1)

    # One fused layout pass: concat raw (x, t), go feature-major, pad batch.
    tx = jnp.concatenate([inp.astype(f32), t.astype(f32)], axis=1).T   # (dim+1, B)

    TB = _choose_block_tb(B, block_tb)
    B_pad = _round_up(B, TB)
    if B_pad != B:
        tx = jnp.pad(tx, ((0, 0), (0, B_pad - B)))
    grid = (B_pad // TB,)

    def data_spec(rows):          # per-tile data, marches along the batch (lane) axis
        return pl.BlockSpec((rows, TB), lambda i: (0, i))

    def const_spec(shape):        # weights, VMEM-resident across the grid
        return pl.BlockSpec(shape, lambda i: (0, 0))

    kernel = functools.partial(
        gennet_kernel, dim=dim, hh=float(hh), inv_TT=float(1.0 / TT),
        tanh_dtype=tanh_dtype)

    outT = pl.pallas_call(
        kernel,
        out_shape=jax.ShapeDtypeStruct((dim, B_pad), f32),
        grid=grid,
        in_specs=[
            data_spec(dim + 1),           # tx = [x; t], feature-major
            const_spec((ns, dim + 1)),    # w1 (normalization folded)
            const_spec((ns, 1)),          # b1 (normalization folded)
            const_spec((ns, ns)),         # w2
            const_spec((ns, 1)),          # b2
            const_spec((ns, ns)),         # w3
            const_spec((ns, 1)),          # b3
            const_spec((dim, ns)),        # wl
            const_spec((dim, 1)),         # bl
        ],
        out_specs=data_spec(dim),
        compiler_params=pltpu.CompilerParams(
            dimension_semantics=("parallel",),    # shard batch tiles across TCs
            vmem_limit_bytes=48 * 1024 * 1024,    # < v7x 64 MiB physical; ample for TB<=32768
        ),
    )(tx, w1, b1f,
      params["w2"].astype(f32), params["b2"].astype(f32),
      params["w3"].astype(f32), params["b3"].astype(f32),
      params["wl"].astype(f32), params["bl"].astype(f32))

    # Back to row-major (B, dim); slice + transpose fuse into one copy under jit.
    return outT[:, :B].T


def init_params(key, dim, ns):
    """Deterministic init mimicking torch.nn.Linear (uniform +/- 1/sqrt(fan_in)).

    Weights kept in PyTorch-native (out_features, in_features) layout; the
    kernel computes Y^T = W @ X^T + b directly.
    """
    def linear(k, fan_in, fan_out):
        kw, kb = jax.random.split(k)
        bound = 1.0 / jnp.sqrt(jnp.float32(fan_in))
        w = jax.random.uniform(kw, (fan_out, fan_in), jnp.float32, -bound, bound)
        b = jax.random.uniform(kb, (fan_out, 1), jnp.float32, -bound, bound)
        return w, b

    k1, k2, k3, k4 = jax.random.split(key, 4)
    w1, b1 = linear(k1, dim + 1, ns)     # lin1: (dim+1) -> ns
    w2, b2 = linear(k2, ns, ns)          # lin2
    w3, b3 = linear(k3, ns, ns)          # lin3
    wl, bl = linear(k4, ns, dim)         # linlast: ns -> dim
    return {
        "w1t": w1[:, :1],                # column multiplying t   (ns, 1)
        "w1x": w1[:, 1:],                # columns multiplying x  (ns, dim)
        "b1": b1,
        "w2": w2, "b2": b2,
        "w3": w3, "b3": b3,
        "wl": wl, "bl": bl,
    }


def reference_forward(t, inp, params, mu, std, hh, TT):
    """Pure-JAX reference mirroring the PyTorch forward (row-major)."""
    t_n = t - TT / 2.0
    x_n = (inp - mu) * (1.0 / std)
    out = jnp.concatenate([t_n, x_n], axis=1)
    w1 = jnp.concatenate([params["w1t"], params["w1x"]], axis=1)   # (ns, dim+1)
    out = jnp.tanh(out @ w1.T + params["b1"].T)
    out = jnp.tanh(out + hh * (out @ params["w2"].T + params["b2"].T))
    out = jnp.tanh(out + hh * (out @ params["w3"].T + params["b3"].T))
    out = out @ params["wl"].T + params["bl"].T
    c1 = t / TT
    c2 = (TT - t) / TT
    return c1 * out + c2 * inp


if __name__ == "__main__":
    B, dim, ns = 8, 4, 32
    hh, TT = 0.1, 1.0

    key = jax.random.PRNGKey(0)
    k_params, k_t, k_x, k_mu, k_std = jax.random.split(key, 5)

    params = init_params(k_params, dim, ns)
    t = jax.random.uniform(k_t, (B, 1), jnp.float32, 0.0, TT)
    inp = jax.random.normal(k_x, (B, dim), jnp.float32)
    mu = jax.random.normal(k_mu, (1, dim), jnp.float32) * 0.1
    std = jax.random.uniform(k_std, (1, dim), jnp.float32, 0.5, 1.5)

    # jit so the small layout / weight-folding ops around the kernel fuse.
    fwd = jax.jit(functools.partial(gennet_forward, hh=hh, TT=TT))
    out = jax.block_until_ready(fwd(t, inp, params, mu, std))

    ref = reference_forward(t, inp, params, mu, std, hh, TT)
    assert out.shape == (B, dim)
    assert jnp.allclose(out, ref, atol=5e-5, rtol=5e-5), "mismatch vs reference"

    print("KERNEL_OK")
</pallas_src>

<mosaic_0001>
module attributes {stable_mosaic.version = 11 : i64} {
  func.func @gennet_kernel(%arg0: i32, %arg1: memref<5x128xf32, #tpu.memory_space<vmem>>, %arg2: memref<32x5xf32, #tpu.memory_space<vmem>>, %arg3: memref<32x1xf32, #tpu.memory_space<vmem>>, %arg4: memref<32x32xf32, #tpu.memory_space<vmem>>, %arg5: memref<32x1xf32, #tpu.memory_space<vmem>>, %arg6: memref<32x32xf32, #tpu.memory_space<vmem>>, %arg7: memref<32x1xf32, #tpu.memory_space<vmem>>, %arg8: memref<4x32xf32, #tpu.memory_space<vmem>>, %arg9: memref<4x1xf32, #tpu.memory_space<vmem>>, %arg10: memref<4x128xf32, #tpu.memory_space<vmem>>) attributes {dimension_semantics = [#tpu.dimension_semantics<parallel>], iteration_bounds = array<i64: 1>, scalar_prefetch = 0 : i64, scratch_operands = 0 : i64, tpu.core_type = #tpu.core_type<tc>, window_params = [{transform_indices = @transform_0, window_bounds = array<i64: 5, 128>}, {pipeline_mode = #tpu.pipeline_mode<synchronous>, transform_indices = @transform_1, window_bounds = array<i64: 32, 5>}, {pipeline_mode = #tpu.pipeline_mode<synchronous>, transform_indices = @transform_2, window_bounds = array<i64: 32, 1>}, {pipeline_mode = #tpu.pipeline_mode<synchronous>, transform_indices = @transform_3, window_bounds = array<i64: 32, 32>}, {pipeline_mode = #tpu.pipeline_mode<synchronous>, transform_indices = @transform_4, window_bounds = array<i64: 32, 1>}, {pipeline_mode = #tpu.pipeline_mode<synchronous>, transform_indices = @transform_5, window_bounds = array<i64: 32, 32>}, {pipeline_mode = #tpu.pipeline_mode<synchronous>, transform_indices = @transform_6, window_bounds = array<i64: 32, 1>}, {pipeline_mode = #tpu.pipeline_mode<synchronous>, transform_indices = @transform_7, window_bounds = array<i64: 4, 32>}, {pipeline_mode = #tpu.pipeline_mode<synchronous>, transform_indices = @transform_8, window_bounds = array<i64: 4, 1>}, {transform_indices = @transform_9, window_bounds = array<i64: 4, 128>}]} {
    %c0 = arith.constant 0 : index
    %c0_0 = arith.constant 0 : index
    %0 = vector.load %arg1[%c0, %c0_0] : memref<5x128xf32, #tpu.memory_space<vmem>>, vector<5x128xf32>
    %1 = vector.extract_strided_slice %0 {offsets = [0, 0], sizes = [4, 128], strides = [1, 1]} : vector<5x128xf32> to vector<4x128xf32>
    %2 = vector.extract_strided_slice %0 {offsets = [4, 0], sizes = [1, 128], strides = [1, 1]} : vector<5x128xf32> to vector<1x128xf32>
    %c0_1 = arith.constant 0 : index
    %c0_2 = arith.constant 0 : index
    %3 = vector.load %arg2[%c0_1, %c0_2] : memref<32x5xf32, #tpu.memory_space<vmem>>, vector<32x5xf32>
    %cst = arith.constant dense<0.000000e+00> : vector<32x128xf32>
    %4 = tpu.matmul %3, %0, %cst {dimension_numbers = #tpu.dot_dimension_numbers<[1], [0], [0], [1], [0, 0, 1, 1], [], []>} : vector<32x5xf32>, vector<5x128xf32>, vector<32x128xf32> -> vector<32x128xf32>
    %c0_3 = arith.constant 0 : index
    %c0_4 = arith.constant 0 : index
    %5 = vector.load %arg3[%c0_3, %c0_4] : memref<32x1xf32, #tpu.memory_space<vmem>>, vector<32x1xf32>
    %6 = vector.broadcast %5 : vector<32x1xf32> to vector<32x128xf32>
    %7 = arith.addf %4, %6 : vector<32x128xf32>
    %8 = math.tanh %7 : vector<32x128xf32>
    %c0_5 = arith.constant 0 : index
    %c0_6 = arith.constant 0 : index
    %9 = vector.load %arg4[%c0_5, %c0_6] : memref<32x32xf32, #tpu.memory_space<vmem>>, vector<32x32xf32>
    %cst_7 = arith.constant dense<0.000000e+00> : vector<32x128xf32>
    %10 = tpu.matmul %9, %8, %cst_7 {dimension_numbers = #tpu.dot_dimension_numbers<[1], [0], [0], [1], [0, 0, 1, 1], [], []>} : vector<32x32xf32>, vector<32x128xf32>, vector<32x128xf32> -> vector<32x128xf32>
    %c0_8 = arith.constant 0 : index
    %c0_9 = arith.constant 0 : index
    %11 = vector.load %arg5[%c0_8, %c0_9] : memref<32x1xf32, #tpu.memory_space<vmem>>, vector<32x1xf32>
    %12 = vector.broadcast %11 : vector<32x1xf32> to vector<32x128xf32>
    %13 = arith.addf %10, %12 : vector<32x128xf32>
    %cst_10 = arith.constant 1.000000e-01 : f32
    %14 = vector.broadcast %cst_10 : f32 to vector<32x128xf32>
    %15 = arith.mulf %14, %13 : vector<32x128xf32>
    %16 = arith.addf %8, %15 : vector<32x128xf32>
    %17 = math.tanh %16 : vector<32x128xf32>
    %c0_11 = arith.constant 0 : index
    %c0_12 = arith.constant 0 : index
    %18 = vector.load %arg6[%c0_11, %c0_12] : memref<32x32xf32, #tpu.memory_space<vmem>>, vector<32x32xf32>
    %cst_13 = arith.constant dense<0.000000e+00> : vector<32x128xf32>
    %19 = tpu.matmul %18, %17, %cst_13 {dimension_numbers = #tpu.dot_dimension_numbers<[1], [0], [0], [1], [0, 0, 1, 1], [], []>} : vector<32x32xf32>, vector<32x128xf32>, vector<32x128xf32> -> vector<32x128xf32>
    %c0_14 = arith.constant 0 : index
    %c0_15 = arith.constant 0 : index
    %20 = vector.load %arg7[%c0_14, %c0_15] : memref<32x1xf32, #tpu.memory_space<vmem>>, vector<32x1xf32>
    %21 = vector.broadcast %20 : vector<32x1xf32> to vector<32x128xf32>
    %22 = arith.addf %19, %21 : vector<32x128xf32>
    %cst_16 = arith.constant 1.000000e-01 : f32
    %23 = vector.broadcast %cst_16 : f32 to vector<32x128xf32>
    %24 = arith.mulf %23, %22 : vector<32x128xf32>
    %25 = arith.addf %17, %24 : vector<32x128xf32>
    %26 = math.tanh %25 : vector<32x128xf32>
    %c0_17 = arith.constant 0 : index
    %c0_18 = arith.constant 0 : index
    %27 = vector.load %arg8[%c0_17, %c0_18] : memref<4x32xf32, #tpu.memory_space<vmem>>, vector<4x32xf32>
    %cst_19 = arith.constant dense<0.000000e+00> : vector<4x128xf32>
    %28 = tpu.matmul %27, %26, %cst_19 {dimension_numbers = #tpu.dot_dimension_numbers<[1], [0], [0], [1], [0, 0, 1, 1], [], []>} : vector<4x32xf32>, vector<32x128xf32>, vector<4x128xf32> -> vector<4x128xf32>
    %c0_20 = arith.constant 0 : index
    %c0_21 = arith.constant 0 : index
    %29 = vector.load %arg9[%c0_20, %c0_21] : memref<4x1xf32, #tpu.memory_space<vmem>>, vector<4x1xf32>
    %30 = vector.broadcast %29 : vector<4x1xf32> to vector<4x128xf32>
    %31 = arith.addf %28, %30 : vector<4x128xf32>
    %cst_22 = arith.constant 1.000000e+00 : f32
    %32 = vector.broadcast %cst_22 : f32 to vector<1x128xf32>
    %33 = arith.mulf %2, %32 : vector<1x128xf32>
    %34 = vector.broadcast %33 : vector<1x128xf32> to vector<4x128xf32>
    %35 = arith.mulf %34, %31 : vector<4x128xf32>
    %cst_23 = arith.constant 1.000000e+00 : f32
    %36 = vector.broadcast %cst_23 : f32 to vector<1x128xf32>
    %37 = arith.subf %36, %33 : vector<1x128xf32>
    %38 = vector.broadcast %37 : vector<1x128xf32> to vector<4x128xf32>
    %39 = arith.mulf %38, %1 : vector<4x128xf32>
    %40 = arith.addf %35, %39 : vector<4x128xf32>
    %c0_24 = arith.constant 0 : index
    %c0_25 = arith.constant 0 : index
    %41 = vector.load %arg10[%c0_24, %c0_25] : memref<4x128xf32, #tpu.memory_space<vmem>>, vector<4x128xf32>
    tpu.vector_store %arg10[%c0_24, %c0_25], %40 {strides = array<i32>} : memref<4x128xf32, #tpu.memory_space<vmem>>, vector<4x128xf32>,
    return
  }
  func.func @transform_0(%arg0: i32) -> (i32, i32) {
    %c0_i32 = arith.constant 0 : i32
    %c0_i32_0 = arith.constant 0 : i32
    return %c0_i32, %arg0 : i32, i32
  }
  func.func @transform_1(%arg0: i32) -> (i32, i32) {
    %c0_i32 = arith.constant 0 : i32
    %c0_i32_0 = arith.constant 0 : i32
    %c0_i32_1 = arith.constant 0 : i32
    return %c0_i32, %c0_i32_0 : i32, i32
  }
  func.func @transform_2(%arg0: i32) -> (i32, i32) {
    %c0_i32 = arith.constant 0 : i32
    %c0_i32_0 = arith.constant 0 : i32
    %c0_i32_1 = arith.constant 0 : i32
    return %c0_i32, %c0_i32_0 : i32, i32
  }
  func.func @transform_3(%arg0: i32) -> (i32, i32) {
    %c0_i32 = arith.constant 0 : i32
    %c0_i32_0 = arith.constant 0 : i32
    %c0_i32_1 = arith.constant 0 : i32
    return %c0_i32, %c0_i32_0 : i32, i32
  }
  func.func @transform_4(%arg0: i32) -> (i32, i32) {
    %c0_i32 = arith.constant 0 : i32
    %c0_i32_0 = arith.constant 0 : i32
    %c0_i32_1 = arith.constant 0 : i32
    return %c0_i32, %c0_i32_0 : i32, i32
  }
  func.func @transform_5(%arg0: i32) -> (i32, i32) {
    %c0_i32 = arith.constant 0 : i32
    %c0_i32_0 = arith.constant 0 : i32
    %c0_i32_1 = arith.constant 0 : i32
    return %c0_i32, %c0_i32_0 : i32, i32
  }
  func.func @transform_6(%arg0: i32) -> (i32, i32) {
    %c0_i32 = arith.constant 0 : i32
    %c0_i32_0 = arith.constant 0 : i32
    %c0_i32_1 = arith.constant 0 : i32
    return %c0_i32, %c0_i32_0 : i32, i32
  }
  func.func @transform_7(%arg0: i32) -> (i32, i32) {
    %c0_i32 = arith.constant 0 : i32
    %c0_i32_0 = arith.constant 0 : i32
    %c0_i32_1 = arith.constant 0 : i32
    return %c0_i32, %c0_i32_0 : i32, i32
  }
  func.func @transform_8(%arg0: i32) -> (i32, i32) {
    %c0_i32 = arith.constant 0 : i32
    %c0_i32_0 = arith.constant 0 : i32
    %c0_i32_1 = arith.constant 0 : i32
    return %c0_i32, %c0_i32_0 : i32, i32
  }
  func.func @transform_9(%arg0: i32) -> (i32, i32) {
    %c0_i32 = arith.constant 0 : i32
    %c0_i32_0 = arith.constant 0 : i32
    return %c0_i32, %arg0 : i32, i32
  }
}

</mosaic_0001>

<bundles_post_ra>
// kernel: sub.3
= control target key start
LH: loop header
LB: loop body
LE: loop exit
PB: predicated region body
PF: predicated region fallthrough
CT: control target
= control target key end

     0   :  { %s100_s0 = inlined_call_operand.vmem [shape: f32[32,1], index: 0, kind: input, shape index: {}]   ;;  %s101_s1 = inlined_call_operand.vmem [shape: f32[32,1], index: 1, kind: input, shape index: {}]   ;;  %s102_s2 = inlined_call_operand.vmem [shape: f32[32,1], index: 2, kind: output, shape index: {}]  }
   0x1   :  { %v3_v0 = vld [vmem:[%s100_s0] sm:$0xff]  ;;  %v40_v2 = vld [vmem:[%s100_s0 + $0x8] sm:$0xff]  ;;  %v43_v5 = vld [vmem:[%s100_s0 + $0x10] sm:$0xff] }
   0x2   :  { %v4_v1 = vld [vmem:[%s101_s1] sm:$0xff]  ;;  %v41_v4 = vld [vmem:[%s101_s1 + $0x8] sm:$0xff]  ;;  %v44_v6 = vld [vmem:[%s101_s1 + $0x10] sm:$0xff] }
   0x3   :  { %v7_v3 = vsub.f32 %v3_v0, %v4_v1  ;;  %v16_v7 = vsub.f32 %v40_v2, %v41_v4  ;;  %v26_v8 = vsub.f32 %v43_v5, %v44_v6  ;;  %v46_v9 = vld [vmem:[%s100_s0 + $0x18] sm:$0xff] }
   0x4   :  { %v47_v10 = vld [vmem:[%s101_s1 + $0x18] sm:$0xff] }
   0x5   :  { %9 = vst [vmem:[%s102_s2] sm:$0xff] %v7_v3  ;;  %v36_v11 = vsub.f32 %v46_v9, %v47_v10  ;;  %42 = vst [vmem:[%s102_s2 + $0x8] sm:$0xff] %v16_v7 }
   0x6   :  { %45 = vst [vmem:[%s102_s2 + $0x10] sm:$0xff] %v26_v8 }
   0x7   :  { %48 = vst [vmem:[%s102_s2 + $0x18] sm:$0xff] %v36_v11 }

// kernel: gennet_forward.1
= control target key start
LH: loop header
LB: loop body
LE: loop exit
PB: predicated region body
PF: predicated region fallthrough
CT: control target
= control target key end

     0   :  { %vm74_vm0 = vcmask 1044480   ;;  %vm61_vm1 = vcmask 39936   ;;  %v655_v3 = vmov 0   ;;  %vm195_vm2 = vcmask 261120   ;;  %s812_s0 = inlined_call_operand.vmem [shape: f32[5,128], index: 0, kind: input, shape index: {}]   ;;  %s813_s1 = inlined_call_operand.vmem [shape: f32[32,5], index: 1, kind: input, shape index: {}]   ;;  %s814_s2 = inlined_call_operand.vmem [shape: f32[32,1], index: 2, kind: input, shape index: {}]   ;;  %s815_s4 = inlined_call_operand.vmem [shape: f32[32,1], index: 4, kind: input, shape index: {}]   ;;  %s816_s6 = inlined_call_operand.vmem [shape: f32[32,1], index: 6, kind: input, shape index: {}]   ;;  %s817_s8 = inlined_call_operand.vmem [shape: f32[4,1], index: 8, kind: input, shape index: {}]   ;;  %s818_s3 = inlined_call_operand.vmem [shape: f32[32,32], index: 3, kind: input, shape index: {}]   ;;  %s819_s5 = inlined_call_operand.vmem [shape: f32[32,32], index: 5, kind: input, shape index: {}]   ;;  %s820_s7 = inlined_call_operand.vmem [shape: f32[4,32], index: 7, kind: input, shape index: {}]   ;;  %s821_s9 = inlined_call_operand.vmem [shape: f32[4,128], index: 9, kind: output, shape index: {}]  }
   0x1   :  { %v711_v0 = vld [vmem:[%s812_s0] sm:$0x1f]  ;;  %v34_v2 = vld [vmem:[%s813_s1 + $0x8] sm:$0xff]  ;;  %629 = vset.pattern.permute.xlu0 %v655_v3  ;;  %630 = vset.pattern.permute.xlu1 %v655_v3  ;;  %v35_v4 = vld [vmem:[%s813_s1 + $0x10] sm:$0xff]  ;;  %vm657_vm3 = vmmov 0  }
   0x2   :  { %v33_v1 = vld [vmem:[%s813_s1] sm:$0xff]  ;;  %579 = vmatprep.subr.msk.mxu0 %vm74_vm0, %v711_v0  ;;  %v40_v5 = vld [vmem:[%s814_s2 + $0x18] sm:$0xff]  ;;  %v38_v6 = vld [vmem:[%s814_s2 + $0x8] sm:$0xff] }
   0x3   :  { %581 = vmatprep.mubr.msk.f32.mxu0 %vm61_vm1, %v33_v1  ;;  %580 = vmatpush3.msk.msra.mxu0 %vm74_vm0, %v711_v0  ;;  %v39_v7 = vld [vmem:[%s814_s2 + $0x10] sm:$0xff]  ;;  %v36_v8 = vld [vmem:[%s813_s1 + $0x18] sm:$0xff]  ;;  %v37_v9 = vld [vmem:[%s814_s2] sm:$0xff] }
   0x4   :  { %58 = vperm.xlu0 %629, %v40_v5   ;;  %582 = vmatmul.mubr.msk.f32.vlgmr.msra.gmra.mxu0 %vm61_vm1, %v34_v2  ;;  %v174_v10 = vld [vmem:[%s815_s4 + $0x18] sm:$0xff]  ;;  %v173_v11 = vld [vmem:[%s815_s4 + $0x10] sm:$0xff]  ;;  %v172_v12 = vld [vmem:[%s815_s4 + $0x8] sm:$0xff] }
   0x5   :  { %48 = vperm.xlu1 %630, %v38_v6   ;;  %584 = vmatprep.mubr.msk.f32.mxu0 %vm61_vm1, %v35_v4  ;;  %v171_v13 = vld [vmem:[%s815_s4] sm:$0xff]  ;;  %v312_v14 = vld [vmem:[%s816_s6 + $0x18] sm:$0xff]  ;;  %v311_v15 = vld [vmem:[%s816_s6 + $0x10] sm:$0xff]  ;;  %v656_v4 = vmov 0.0  }
   0x6   :  { %v310_v16 = vld [vmem:[%s816_s6 + $0x8] sm:$0xff]  ;;  %v309_v17 = vld [vmem:[%s816_s6] sm:$0xff]  ;;  %v169_v37 = vld [vmem:[%s818_s3 + $0x10] sm:$0xff] }
   0x7   :  { %v443_v18 = vld [vmem:[%s817_s8] sm:$0xf]  ;;  %v168_v36 = vld [vmem:[%s818_s3 + $0x8] sm:$0xff]  ;;  %v170_v38 = vld [vmem:[%s818_s3 + $0x18] sm:$0xff] }
   0x8   :  { %53 = vperm.xlu0 %629, %v39_v7   ;;  %585 = vmatmul.mubr.msk.f32.gmra.mxu0 %vm61_vm1, %v36_v8  ;;  %v167_v19 = vld [vmem:[%s818_s3] sm:$0xff]  ;;  %v306_v1 = vld [vmem:[%s819_s5 + $0x8] sm:$0xff]  ;;  %v307_v2 = vld [vmem:[%s819_s5 + $0x10] sm:$0xff] }
   0x9   :  { %43 = vperm.xlu1 %630, %v37_v9   ;;  %595 = vmatprep.mubr.msk.f32.mxu1 %vm195_vm2, %v167_v19  ;;  %v305_v39 = vld [vmem:[%s819_s5] sm:$0xff]  ;;  %v308_v3 = vld [vmem:[%s819_s5 + $0x18] sm:$0xff] }
   0xa   :  { %609 = vmatprep.mubr.msk.f32.mxu0 %vm195_vm2, %v305_v39 }
   0xc   :  { %192 = vperm.xlu0 %629, %v174_v10  }
   0xd   :  { %187 = vperm.xlu1 %630, %v173_v11  }
  0x10   :  { %182 = vperm.xlu0 %629, %v172_v12  }
  0x11   :  { %177 = vperm.xlu1 %630, %v171_v13  }
  0x14   :  { %330 = vperm.xlu0 %629, %v312_v14  }
  0x15   :  { %325 = vperm.xlu1 %630, %v311_v15  }
  0x18   :  { %320 = vperm.xlu0 %629, %v310_v16  }
  0x19   :  { %315 = vperm.xlu1 %630, %v309_v17  }
  0x1c   :  { %446 = vperm.xlu0 %629, %v443_v18  }
  0x7f   :  { %v59_v20 = vpop.permute.xlu0 %58 }
  0x80   :  { %v49_v22 = vpop.permute.xlu1 %48 }
  0x83   :  { %v54_v26 = vpop.permute.xlu0 %53 }
  0x84   :  { %v44_v30 = vpop.permute.xlu1 %43 }
  0x87   :  { %v193_v40 = vpop.permute.xlu0 %192 }
  0x88   :  { %v188_v41 = vpop.permute.xlu1 %187 }
  0x8b   :  { %v183_v43 = vpop.permute.xlu0 %182 }
  0x8c   :  { %v178_v46 = vpop.permute.xlu1 %177 }
  0x8f   :  { %v331_v5 = vpop.permute.xlu0 %330 }
  0x90   :  { %v326_v6 = vpop.permute.xlu1 %325 }
  0x93   :  { %v321_v8 = vpop.permute.xlu0 %320 }
  0x94   :  { %v316_v11 = vpop.permute.xlu1 %315 }
  0xc4   :  { %v583_v21 = vpop.f32.mrf.mxu0 }
  0xc5   :  { %v150_v28 = vadd.f32 %v583_v21, %v49_v22 }
  0xc6   :  { %v144_v23 = vpop.f32.mrf.mxu0 }
  0xc7   :  { %v145_v31 = vadd.f32 %v144_v23, %v44_v30  ;;  %v522_v30 = vlaneseq }
  0xc8   :  { %v586_v24 = vpop.f32.mrf.mxu0 }
  0xc9   :  { %v160_v25 = vadd.f32 %v586_v24, %v59_v20 }
  0xca   :  { %v154_v27 = vpop.f32.mrf.mxu0 }
  0xcb   :  { %631 = vtanh.f32 %v160_v25  ;;  %v155_v29 = vadd.f32 %v154_v27, %v54_v26 }
  0xcd   :  { %633 = vtanh.f32 %v155_v29 }
  0xce   :  { %635 = vtanh.f32 %v150_v28  ;;  %v442_v28 = vld [vmem:[%s820_s7] sm:$0xf] }
  0xcf   :  { %637 = vtanh.f32 %v145_v31  ;;  %v523_v31 = vshrl.u32 %v522_v30, 7 }
  0xd8   :  { %v632_v32 = vpop.eup %631 }
  0xd9   :  { %587 = vmatprep.subr.mxu1 %v632_v32 }
  0xda   :  { %v634_v33 = vpop.eup %633  ;;  %588 = vmatpush3.msra.mxu1 %v632_v32 }
  0xdb   :  { %589 = vmatprep.subr.mxu1 %v634_v33  ;;  %v636_v34 = vpop.eup %635 }
  0xdc   :  { %590 = vmatpush3.msra.mxu1 %v634_v33  ;;  %v638_v35 = vpop.eup %637 }
  0xdd   :  { %591 = vmatprep.subr.mxu1 %v636_v34 }
  0xde   :  { %592 = vmatpush3.msra.mxu1 %v636_v34 }
  0xdf   :  { %593 = vmatprep.subr.mxu1 %v638_v35 }
  0xe0   :  { %594 = vmatpush3.msra.mxu1 %v638_v35 }
  0xe1   :  { %596 = vmatmul.mubr.msk.f32.vlgmr.msra.gmra.mxu1 %vm195_vm2, %v168_v36  ;;  %615 = vmatprep.subr.mxu1 %v656_v4  ;;  %v447_v36 = vpop.permute.xlu0 %446 }
  0xe2   :  { %598 = vmatprep.mubr.msk.f32.mxu1 %vm195_vm2, %v169_v37 }
  0xe5   :  { %599 = vmatmul.mubr.msk.f32.gmra.mxu1 %vm195_vm2, %v170_v38 }
  0xe6   :  { %623 = vmatprep.mubr.msk.f32.mxu1 %vm657_vm3, %v656_v4 }
 0x1a1   :  { %v597_v42 = vpop.f32.mrf.mxu1 }
 0x1a2   :  { %v280_v45 = vadd.f32 %v597_v42, %v183_v43 }
 0x1a3   :  { %v274_v44 = vpop.f32.mrf.mxu1 }
 0x1a4   :  { %v275_v48 = vadd.f32 %v274_v44, %v178_v46  ;;  %v294_v51 = vmul.f32 0.1, %v280_v45 }
 0x1a5   :  { %v600_v47 = vpop.f32.mrf.mxu1 }
 0x1a6   :  { %v290_v49 = vadd.f32 %v600_v47, %v193_v40  ;;  %v293_v54 = vmul.f32 0.1, %v275_v48  ;;  %v298_v57 = vadd.f32 %v636_v34, %v294_v51 }
 0x1a7   :  { %v284_v50 = vpop.f32.mrf.mxu1 }
 0x1a8   :  { %v296_v52 = vmul.f32 0.1, %v290_v49  ;;  %v285_v53 = vadd.f32 %v284_v50, %v188_v41  ;;  %v297_v59 = vadd.f32 %v638_v35, %v293_v54 }
 0x1aa   :  { %v300_v55 = vadd.f32 %v632_v32, %v296_v52  ;;  %v295_v56 = vmul.f32 0.1, %v285_v53  ;;  %v524_v32 = vsub.s32 4, %v523_v31 }
 0x1ac   :  { %639 = vtanh.f32 %v300_v55  ;;  %v299_v58 = vadd.f32 %v634_v33, %v295_v56  ;;  %v527_v33 = vsub.f32 1.0, %v711_v0  ;;  %v525_v35 = vrot.slane %v711_v0, %v524_v32 }
 0x1ae   :  { %641 = vtanh.f32 %v299_v58  ;;  %v531_v34 = vrot.slane %v527_v33, %v524_v32 }
 0x1af   :  { %643 = vtanh.f32 %v298_v57 }
 0x1b0   :  { %645 = vtanh.f32 %v297_v59  ;;  %v532_v39 = vmul.f32 %v531_v34, %v711_v0 }
 0x1b9   :  { %v640_v60 = vpop.eup %639 }
 0x1ba   :  { %601 = vmatprep.subr.mxu0 %v640_v60 }
 0x1bb   :  { %v642_v61 = vpop.eup %641  ;;  %602 = vmatpush3.msra.mxu0 %v640_v60 }
 0x1bc   :  { %603 = vmatprep.subr.mxu0 %v642_v61  ;;  %v644_v62 = vpop.eup %643 }
 0x1bd   :  { %604 = vmatpush3.msra.mxu0 %v642_v61  ;;  %v646_v63 = vpop.eup %645 }
 0x1be   :  { %605 = vmatprep.subr.mxu0 %v644_v62 }
 0x1bf   :  { %606 = vmatpush3.msra.mxu0 %v644_v62 }
 0x1c0   :  { %607 = vmatprep.subr.mxu0 %v646_v63 }
 0x1c1   :  { %608 = vmatpush3.msra.mxu0 %v646_v63 }
 0x1c2   :  { %610 = vmatmul.mubr.msk.f32.vlgmr.msra.gmra.mxu0 %vm195_vm2, %v306_v1 }
 0x1c3   :  { %612 = vmatprep.mubr.msk.f32.mxu0 %vm195_vm2, %v307_v2 }
 0x1c6   :  { %613 = vmatmul.mubr.msk.f32.gmra.mxu0 %vm195_vm2, %v308_v3 }
 0x282   :  { %v611_v7 = vpop.f32.mrf.mxu0 }
 0x283   :  { %v417_v10 = vadd.f32 %v611_v7, %v321_v8 }
 0x284   :  { %v411_v9 = vpop.f32.mrf.mxu0 }
 0x285   :  { %v412_v13 = vadd.f32 %v411_v9, %v316_v11  ;;  %v431_v16 = vmul.f32 0.1, %v417_v10 }
 0x286   :  { %v614_v12 = vpop.f32.mrf.mxu0 }
 0x287   :  { %v427_v14 = vadd.f32 %v614_v12, %v331_v5  ;;  %v430_v19 = vmul.f32 0.1, %v412_v13  ;;  %v435_v22 = vadd.f32 %v644_v62, %v431_v16 }
 0x288   :  { %v421_v15 = vpop.f32.mrf.mxu0 }
 0x289   :  { %v433_v17 = vmul.f32 0.1, %v427_v14  ;;  %v422_v18 = vadd.f32 %v421_v15, %v326_v6  ;;  %v434_v24 = vadd.f32 %v646_v63, %v430_v19 }
 0x28b   :  { %v437_v20 = vadd.f32 %v640_v60, %v433_v17  ;;  %v432_v21 = vmul.f32 0.1, %v422_v18 }
 0x28d   :  { %647 = vtanh.f32 %v437_v20  ;;  %v436_v23 = vadd.f32 %v642_v61, %v432_v21 }
 0x28f   :  { %649 = vtanh.f32 %v436_v23 }
 0x290   :  { %651 = vtanh.f32 %v435_v22 }
 0x291   :  { %653 = vtanh.f32 %v434_v24 }
 0x29a   :  { %v648_v25 = vpop.eup %647 }
 0x29b   :  { %616 = vmatpush3.msra.mxu1 %v648_v25 }
 0x29c   :  { %v650_v26 = vpop.eup %649  ;;  %617 = vmatprep.subr.mxu1 %v656_v4 }
 0x29d   :  { %618 = vmatpush3.msra.mxu1 %v650_v26  ;;  %v652_v27 = vpop.eup %651 }
 0x29e   :  { %619 = vmatprep.subr.mxu1 %v656_v4  ;;  %v654_v29 = vpop.eup %653 }
 0x29f   :  { %620 = vmatpush3.msra.mxu1 %v652_v27 }
 0x2a0   :  { %621 = vmatprep.subr.mxu1 %v656_v4 }
 0x2a1   :  { %622 = vmatpush3.msra.mxu1 %v654_v29 }
 0x2a2   :  { %624 = vmatmul.mubr.msk.f32.vlgmr.msra.gmra.mxu1 %vm195_vm2, %v442_v28 }
 0x362   :  { %v518_v37 = vpop.f32.mrf.mxu1 }
 0x363   :  { %v519_v38 = vadd.f32 %v518_v37, %v447_v36 }
 0x364   :  { %v625_v40 = vpop.f32.mrf.mxu1 }
 0x365   :  { %v526_v41 = vmul.f32 %v525_v35, %v519_v38 }
 0x367   :  { %v533_v42 = vadd.f32 %v532_v39, %v526_v41 }
 0x369   :  { %534 = vst [vmem:[%s821_s9] sm:$0xf] %v533_v42 }

</bundles_post_ra>
